<compile_context>
chip_gen: v5e
topology: v5e:2x2
jax: 0.10.0
libtpu: 0.0.40
codegen_flags: <defaults>
</compile_context>

<pallas_src>
import functools

import jax
import jax.numpy as jnp
from jax.experimental import pallas as pl
from jax.experimental.pallas import tpu as pltpu


def _ru(x, m):
    return (x + m - 1) // m * m


def _cdiv(a, b):
    return -(-a // b)


# ----------------------------------------------------------------------------
# Tile selection (per-layer; explicit VMEM budget, works on v5e/v6e/v7x)
# ----------------------------------------------------------------------------
_WEIGHT_TILE_BUDGET = 6 << 20    # bf16 B (weight) tile bytes per pipeline buffer
_ACT_TILE_BUDGET = 4 << 20       # bf16 A (activation) tile bytes per pipeline buffer
_ACC_TILE_BUDGET = 4 << 20       # f32 accumulator bytes
_VMEM_LIMIT = 48 * 1024 * 1024   # scoped VMEM limit (v7x physical is 64 MiB -> headroom)


def _pick_tiles(M, K, N):
    # ---- N (output-channel / lane) tile ----
    if N <= 512 or N % 128 != 0:
        tn, Np = N, N
    elif M <= 32:
        # GEMV-like layer (fc_dec, deep 7x7 stages): go wide in N but keep a
        # full-K bf16 weight tile inside the per-buffer budget.
        tn = max(128, min(2048, (_WEIGHT_TILE_BUDGET // (K * 2)) // 128 * 128))
        tn = min(tn, _ru(N, 128))
        best = None
        for t in range(tn, 127, -128):
            if N % t == 0:
                best = t
                break
        if best is not None and best >= tn // 2:
            tn = best
        Np = _ru(N, tn)
    else:
        tn = 512
        for t in (512, 384, 256, 128):
            if N % t == 0:
                tn = t
                break
        Np = _ru(N, tn)

    # ---- K (contraction) tile: full-K whenever the weight tile fits ----
    if K % 128 != 0 or K * tn * 2 <= _WEIGHT_TILE_BUDGET:
        tk, Kp = K, K
    else:
        tk = 512
        for t in (2304, 2048, 1536, 1152, 1024, 768, 512, 384, 256, 128):
            if K % t == 0 and t * tn * 2 <= _WEIGHT_TILE_BUDGET:
                tk = t
                break
        Kp = _ru(K, tk)

    # ---- M (row) tile ----
    if M <= 512:
        tm = _ru(max(M, 16), 16)
        Mp = tm
    else:
        hard = 8192 if Np <= 128 else 2048      # narrow-N layers: fewer, larger steps
        cap = min(_ACT_TILE_BUDGET // max(1, Kp * 2),
                  _ACC_TILE_BUDGET // max(1, tn * 4),
                  hard)
        cap = max(256, cap)
        nblk = _cdiv(M, cap)
        tm = _ru(_cdiv(M, nblk), 16)
        Mp = _ru(M, tm)

    # ---- guarantee >=2 parallel grid blocks when cheap (v7x has 2 TensorCores) ----
    if (Mp // tm) * (Np // tn) == 1:
        if tn >= 256 and tn % 256 == 0:
            tn //= 2
        elif tm >= 64 and tm % 32 == 0:
            tm //= 2
    return tm, tk, tn, Mp, Kp, Np


# ----------------------------------------------------------------------------
# Pallas kernels
# ----------------------------------------------------------------------------
def _epilogue(acc, s_ref, t_ref, act, res=None):
    y = acc * s_ref[...] + t_ref[...]
    if res is not None:
        y = y + res.astype(jnp.float32)
    if act == "relu":
        y = jnp.maximum(y, 0.0)
    elif act == "sigmoid":
        y = jax.nn.sigmoid(y)
    return y


def _mm_kernel(a_ref, b_ref, s_ref, t_ref, o_ref, acc_ref, *, act):
    @pl.when(pl.program_id(2) == 0)
    def _():
        acc_ref[...] = jnp.zeros_like(acc_ref)

    acc_ref[...] += jnp.dot(a_ref[...], b_ref[...],
                            preferred_element_type=jnp.float32)

    @pl.when(pl.program_id(2) == pl.num_programs(2) - 1)
    def _():
        o_ref[...] = _epilogue(acc_ref[...], s_ref, t_ref, act).astype(o_ref.dtype)


def _mm_res_kernel(a_ref, b_ref, s_ref, t_ref, r_ref, o_ref, acc_ref, *, act):
    @pl.when(pl.program_id(2) == 0)
    def _():
        acc_ref[...] = jnp.zeros_like(acc_ref)

    acc_ref[...] += jnp.dot(a_ref[...], b_ref[...],
                            preferred_element_type=jnp.float32)

    @pl.when(pl.program_id(2) == pl.num_programs(2) - 1)
    def _():
        o_ref[...] = _epilogue(acc_ref[...], s_ref, t_ref, act,
                               res=r_ref[...]).astype(o_ref.dtype)


@functools.lru_cache(maxsize=None)
def _get_matmul_fn(M, K, N, act, has_res, out_dtype_name):
    """Memoized, jitted fused matmul for one static (shape, act, residual) config."""
    tm, tk, tn, Mp, Kp, Np = _pick_tiles(M, K, N)
    out_dtype = jnp.dtype(out_dtype_name)

    in_specs = [pl.BlockSpec((tm, tk), lambda i, j, k: (i, k)),
                pl.BlockSpec((tk, tn), lambda i, j, k: (k, j)),
                pl.BlockSpec((1, tn), lambda i, j, k: (0, j)),
                pl.BlockSpec((1, tn), lambda i, j, k: (0, j))]
    if has_res:
        in_specs.append(pl.BlockSpec((tm, tn), lambda i, j, k: (i, j)))
        kernel = functools.partial(_mm_res_kernel, act=act)
    else:
        kernel = functools.partial(_mm_kernel, act=act)

    call = pl.pallas_call(
        kernel,
        out_shape=jax.ShapeDtypeStruct((Mp, Np), out_dtype),
        grid=(Mp // tm, Np // tn, Kp // tk),
        in_specs=in_specs,
        out_specs=pl.BlockSpec((tm, tn), lambda i, j, k: (i, j)),
        scratch_shapes=[pltpu.VMEM((tm, tn), jnp.float32)],
        compiler_params=pltpu.CompilerParams(
            dimension_semantics=("parallel", "parallel", "arbitrary"),
            vmem_limit_bytes=_VMEM_LIMIT),
    )

    def run(a, b, scale, shift, residual=None):
        a = a.astype(jnp.bfloat16)
        if (Mp, Kp) != (M, K):
            a = jnp.pad(a, ((0, Mp - M), (0, Kp - K)))
        b = b.astype(jnp.bfloat16)
        if (Kp, Np) != (K, N):
            b = jnp.pad(b, ((0, Kp - K), (0, Np - N)))
        s = scale.astype(jnp.float32)
        t = shift.astype(jnp.float32)
        if Np != N:
            s = jnp.pad(s, (0, Np - N))
            t = jnp.pad(t, (0, Np - N))
        args = [a, b, s.reshape(1, Np), t.reshape(1, Np)]
        if residual is not None:
            r = residual.astype(jnp.bfloat16)
            if (Mp, Np) != (M, N):
                r = jnp.pad(r, ((0, Mp - M), (0, Np - N)))
            args.append(r)
        out = call(*args)
        if (Mp, Np) != (M, N):
            out = out[:M, :N]
        return out

    if has_res:
        fn = lambda a, b, s, t, r: run(a, b, s, t, r)
    else:
        fn = lambda a, b, s, t: run(a, b, s, t)
    return jax.jit(fn)


def pallas_matmul_fused(a, b, scale, shift, act=None, residual=None,
                        out_dtype=jnp.bfloat16):
    """out = act((a @ b) * scale + shift [+ residual]); bf16 MXU tiles, f32 accumulate."""
    M, K = a.shape
    K2, N = b.shape
    assert K == K2
    fn = _get_matmul_fn(M, K, N, act, residual is not None,
                        jnp.dtype(out_dtype).name)
    if residual is not None:
        return fn(a, b, scale, shift, residual)
    return fn(a, b, scale, shift)


# --- fused classifier tail: Conv2d + ReLU + global average pool -------------
def _conv_pool_kernel(a_ref, b_ref, t_ref, o_ref, pool_ref, *, hw, inv_hw, tm):
    i = pl.program_id(1)

    @pl.when(i == 0)
    def _():
        pool_ref[...] = jnp.zeros_like(pool_ref)

    y = jnp.dot(a_ref[0], b_ref[...], preferred_element_type=jnp.float32)
    y = jnp.maximum(y + t_ref[...], 0.0)
    rid = i * tm + jax.lax.broadcasted_iota(jnp.int32, y.shape, 0)
    y = jnp.where(rid < hw, y, 0.0)                 # mask zero-padded rows
    pool_ref[...] += jnp.sum(y, axis=0, keepdims=True)

    @pl.when(i == pl.num_programs(1) - 1)
    def _():
        o_ref[0] = pool_ref[...] * inv_hw


@functools.lru_cache(maxsize=None)
def _get_conv_pool_fn(B, HW, K, N):
    cap = max(256, min(_ACT_TILE_BUDGET // max(1, K * 2), 8192))
    nblk = _cdiv(HW, cap)
    tm = _ru(_cdiv(HW, nblk), 16)
    HWp = _ru(HW, tm)

    call = pl.pallas_call(
        functools.partial(_conv_pool_kernel, hw=HW, inv_hw=1.0 / HW, tm=tm),
        out_shape=jax.ShapeDtypeStruct((B, 1, N), jnp.float32),
        grid=(B, HWp // tm),
        in_specs=[pl.BlockSpec((1, tm, K), lambda b, i: (b, i, 0)),
                  pl.BlockSpec((K, N), lambda b, i: (0, 0)),
                  pl.BlockSpec((1, N), lambda b, i: (0, 0))],
        out_specs=pl.BlockSpec((1, 1, N), lambda b, i: (b, 0, 0)),
        scratch_shapes=[pltpu.VMEM((1, N), jnp.float32)],
        compiler_params=pltpu.CompilerParams(
            dimension_semantics=("parallel", "arbitrary"),
            vmem_limit_bytes=_VMEM_LIMIT),
    )

    def run(a, w, bias):
        a = a.astype(jnp.bfloat16)
        if HWp != HW:
            a = jnp.pad(a, ((0, 0), (0, HWp - HW), (0, 0)))
        t = bias.astype(jnp.float32).reshape(1, N)
        out = call(a, w.astype(jnp.bfloat16), t)
        return out.reshape(B, N)

    return jax.jit(run)


def pallas_conv_relu_avgpool(x, cp, bias):
    """Conv2d(k=3,s=1,p=1) + bias + ReLU + AdaptiveAvgPool2d((1,1)) fused (one kernel)."""
    kh, kw, O = cp["kh"], cp["kw"], cp["O"]
    a, (B, Ho, Wo) = _im2col(x, kh, kw, 1, 1)
    HW = Ho * Wo
    K = kh * kw * x.shape[-1]
    fn = _get_conv_pool_fn(B, HW, K, O)
    return fn(a.reshape(B, HW, K), cp["wm"], bias)


# --- encoder global average pool ---------------------------------------------
def _mean_hw_kernel(x_ref, o_ref, *, inv_hw):
    @pl.when(pl.program_id(1) == 0)
    def _():
        o_ref[...] = jnp.zeros_like(o_ref)

    o_ref[...] += jnp.sum(x_ref[...].astype(jnp.float32), axis=1, keepdims=True)

    @pl.when(pl.program_id(1) == pl.num_programs(1) - 1)
    def _():
        o_ref[...] = o_ref[...] * inv_hw


@functools.lru_cache(maxsize=None)
def _get_avgpool_fn(B, HW, C):
    thw = min(2048, _ru(HW, 16))
    HWp = _ru(HW, thw)
    call = pl.pallas_call(
        functools.partial(_mean_hw_kernel, inv_hw=1.0 / HW),
        out_shape=jax.ShapeDtypeStruct((B, 1, C), jnp.float32),
        grid=(B, HWp // thw),
        in_specs=[pl.BlockSpec((1, thw, C), lambda b, h: (b, h, 0))],
        out_specs=pl.BlockSpec((1, 1, C), lambda b, h: (b, 0, 0)),
        compiler_params=pltpu.CompilerParams(
            dimension_semantics=("parallel", "arbitrary"),
            vmem_limit_bytes=_VMEM_LIMIT),
    )

    def run(x):
        x = x.reshape(B, HW, C)
        if HWp != HW:
            x = jnp.pad(x, ((0, 0), (0, HWp - HW), (0, 0)))
        return call(x).reshape(B, C)

    return jax.jit(run)


def pallas_global_avgpool(x):
    """AdaptiveAvgPool2d((1,1)) + flatten: x [B,H,W,C] NHWC -> [B,C] f32."""
    B, H, W, C = x.shape
    return _get_avgpool_fn(B, H * W, C)(x)


# ----------------------------------------------------------------------------
# Layer glue (im2col / pooling / interleave are pure data movement;
# all MACs go through the Pallas kernels above)
# ----------------------------------------------------------------------------
def bn_init(c):
    return dict(gamma=jnp.ones((c,), jnp.float32), beta=jnp.zeros((c,), jnp.float32),
                mean=jnp.zeros((c,), jnp.float32), var=jnp.ones((c,), jnp.float32))


def _fold_bn_bias(bn, bias, c, eps=1e-5):
    if bn is not None:
        scale = bn["gamma"] / jnp.sqrt(bn["var"] + eps)
        shift = bn["beta"] - bn["mean"] * scale
    else:
        scale = jnp.ones((c,), jnp.float32)
        shift = jnp.zeros((c,), jnp.float32)
    if bias is not None:
        shift = shift + scale * bias
    return scale, shift


def _im2col(x, kh, kw, stride, padding):
    B, H, W, C = x.shape
    if padding:
        x = jnp.pad(x, ((0, 0), (padding, padding), (padding, padding), (0, 0)))
    Hp, Wp = x.shape[1], x.shape[2]
    Ho = (Hp - kh) // stride + 1
    Wo = (Wp - kw) // stride + 1
    if kh == 1 and kw == 1:
        xs = x[:, ::stride, ::stride, :]
        return xs.reshape(B * Ho * Wo, C), (B, Ho, Wo)
    cols = []
    for i in range(kh):
        for j in range(kw):
            cols.append(x[:, i:i + stride * (Ho - 1) + 1:stride,
                          j:j + stride * (Wo - 1) + 1:stride, :])
    a = jnp.concatenate(cols, axis=-1).reshape(B * Ho * Wo, kh * kw * C)
    return a, (B, Ho, Wo)


def conv2d_fused(x, cp, stride=1, padding=0, bn=None, bias=None, act=None,
                 residual=None, out_dtype=jnp.bfloat16):
    kh, kw, O = cp["kh"], cp["kw"], cp["O"]
    a, (B, Ho, Wo) = _im2col(x, kh, kw, stride, padding)
    scale, shift = _fold_bn_bias(bn, bias, O)
    y = pallas_matmul_fused(a, cp["wm"], scale, shift, act=act,
                            residual=residual, out_dtype=out_dtype)
    return y.reshape(B, Ho, Wo, O)


def conv_transpose2d_subpixel(x, st, act=None):
    # ConvTranspose2d(k=3, s=2, p=1, output_padding=1) == the 4 sub-pixel output phases
    # of a single 2x2 conv over the un-dilated input (weights combined at init time).
    B, H, W, I = x.shape
    O = st["O"]
    xp = jnp.pad(x, ((0, 0), (0, 1), (0, 1), (0, 0)))
    a, _ = _im2col(xp, 2, 2, 1, 0)                       # (B*H*W, 4*I)
    scale, shift = _fold_bn_bias(st["bn"], st["bias"], O)
    y = pallas_matmul_fused(a, st["wc"], jnp.tile(scale, 4), jnp.tile(shift, 4),
                            act=act)                     # (B*H*W, 4*O)
    y = y.reshape(B, H, W, 2, 2, O)
    y = jnp.transpose(y, (0, 1, 3, 2, 4, 5)).reshape(B, 2 * H, 2 * W, O)
    return y


def maxpool2d(x, k=3, stride=2, padding=1):
    x = jnp.pad(x, ((0, 0), (padding, padding), (padding, padding), (0, 0)),
                constant_values=-jnp.inf)
    Hp, Wp = x.shape[1], x.shape[2]
    Ho = (Hp - k) // stride + 1
    Wo = (Wp - k) // stride + 1
    out = None
    for i in range(k):
        for j in range(k):
            s = x[:, i:i + stride * (Ho - 1) + 1:stride,
                  j:j + stride * (Wo - 1) + 1:stride, :]
            out = s if out is None else jnp.maximum(out, s)
    return out


# ----------------------------------------------------------------------------
# Parameter construction (deterministic; weights pre-cast/reshaped to bf16 matmul
# layout; 64-channel layers zero-padded to 128 lanes at build time)
# ----------------------------------------------------------------------------
class ParamGen:
    def __init__(self, seed=0):
        self._key = jax.random.PRNGKey(seed)

    def key(self):
        self._key, k = jax.random.split(self._key)
        return k

    def conv(self, o, i, kh, kw, o_pad=None, i_pad=None):
        o_pad = o if o_pad is None else o_pad
        i_pad = i if i_pad is None else i_pad
        std = (2.0 / (i * kh * kw)) ** 0.5
        w = std * jax.random.normal(self.key(), (o, i, kh, kw), jnp.float32)
        if (o_pad, i_pad) != (o, i):
            w = jnp.pad(w, ((0, o_pad - o), (0, i_pad - i), (0, 0), (0, 0)))
        wm = (jnp.transpose(w, (2, 3, 1, 0))
              .reshape(kh * kw * i_pad, o_pad).astype(jnp.bfloat16))
        return dict(wm=wm, kh=kh, kw=kw, O=o_pad)

    def convT_subpixel(self, i, o):
        # PyTorch ConvTranspose2d weight (I, O, 3, 3) -> combined (4I, 4O) sub-pixel matrix
        std = (2.0 / (o * 9)) ** 0.5
        w = std * jax.random.normal(self.key(), (i, o, 3, 3), jnp.float32)
        Z = jnp.zeros((i, o), jnp.float32)
        tap = lambda a, b: w[:, :, a, b]
        col_ee = [tap(1, 1), Z, Z, Z]                          # out[2m,   2n  ]
        col_eo = [tap(1, 2), tap(1, 0), Z, Z]                  # out[2m,   2n+1]
        col_oe = [tap(2, 1), Z, tap(0, 1), Z]                  # out[2m+1, 2n  ]
        col_oo = [tap(2, 2), tap(2, 0), tap(0, 2), tap(0, 0)]  # out[2m+1, 2n+1]
        wc = jnp.concatenate(
            [jnp.concatenate(c, axis=0) for c in (col_ee, col_eo, col_oe, col_oo)],
            axis=1).astype(jnp.bfloat16)
        return dict(wc=wc, O=o)

    def linear(self, o, i):
        std = (1.0 / i) ** 0.5
        w = std * jax.random.normal(self.key(), (o, i), jnp.float32)
        b = std * jax.random.normal(self.key(), (o,), jnp.float32)
        return w.T.astype(jnp.bfloat16), b                  # (in, out) bf16 matmul layout

    def bias(self, c):
        return jnp.zeros((c,), jnp.float32)


def make_resnet101(g):
    CP = 128   # pad 64-channel activations to full lane width (zero weight rows/cols)
    p = dict(conv1=g.conv(64, 3, 7, 7, o_pad=CP), bn1=bn_init(CP), layers=[])
    inplanes, inplanes_pad = 64, CP
    for planes, blocks, stride in [(64, 3, 1), (128, 4, 2), (256, 23, 2), (512, 3, 2)]:
        pp = max(planes, CP)
        layer = []
        for b in range(blocks):
            s = stride if b == 0 else 1
            blk = dict(
                conv1=g.conv(planes, inplanes, 1, 1, o_pad=pp, i_pad=inplanes_pad),
                bn1=bn_init(pp),
                conv2=g.conv(planes, planes, 3, 3, o_pad=pp, i_pad=pp),
                bn2=bn_init(pp),
                conv3=g.conv(planes * 4, planes, 1, 1, i_pad=pp),
                bn3=bn_init(planes * 4),
                stride=s)
            if b == 0:
                blk["down_conv"] = g.conv(planes * 4, inplanes, 1, 1, i_pad=inplanes_pad)
                blk["down_bn"] = bn_init(planes * 4)
            layer.append(blk)
            inplanes, inplanes_pad = planes * 4, planes * 4
        p["layers"].append(layer)
    return p


def make_decoder(g):
    specs = [(512, 256), (256, 128), (128, 64), (64, 32), (32, 3)]
    dec = []
    for idx, (i, o) in enumerate(specs):
        st = g.convT_subpixel(i, o)
        st["bias"] = g.bias(o)
        st["bn"] = bn_init(o) if idx < 4 else None
        dec.append(st)
    return dec


def make_params(seed=0, num_classes=12):
    g = ParamGen(seed)
    enc = make_resnet101(g)
    wT, b = g.linear(512 * 7 * 7, 2048)
    # pre-permute fc_dec output columns so the (B,25088) result reshapes directly to
    # (B,7,7,512) NHWC (torch does .view(B,512,7,7), i.e. CHW order) -> no XLA transpose.
    j = jnp.arange(512 * 7 * 7)
    c, w_, h = j % 512, (j // 512) % 7, j // (512 * 7)
    perm = c * 49 + h * 7 + w_
    wT, b = wT[:, perm], b[perm]
    return dict(
        encoder=enc,
        fc_dec=(wT, b),
        decoder=make_decoder(g),
        cls_conv=dict(conv=g.conv(16, 3, 3, 3), bias=g.bias(16)),
        cls_fc=g.linear(num_classes, 16),
    )


# ----------------------------------------------------------------------------
# Forward pass
# ----------------------------------------------------------------------------
def bottleneck(x, p):
    out = conv2d_fused(x, p["conv1"], 1, 0, bn=p["bn1"], act="relu")
    out = conv2d_fused(out, p["conv2"], p["stride"], 1, bn=p["bn2"], act="relu")
    if "down_conv" in p:
        identity = conv2d_fused(x, p["down_conv"], p["stride"], 0,
                                bn=p["down_bn"], act=None)
    else:
        identity = x
    B, H, W, C = identity.shape
    # conv3 + BN3 + residual add + ReLU fused into one Pallas matmul epilogue
    return conv2d_fused(out, p["conv3"], 1, 0, bn=p["bn3"], act="relu",
                        residual=identity.reshape(B * H * W, C))


def encoder_forward(x, p):
    x = conv2d_fused(x, p["conv1"], 2, 3, bn=p["bn1"], act="relu")
    x = maxpool2d(x, 3, 2, 1)
    for layer in p["layers"]:
        for blk in layer:
            x = bottleneck(x, blk)
    return pallas_global_avgpool(x)      # AdaptiveAvgPool2d((1,1)) + flatten -> [B, 2048]


def ae_avgpool_forward(x_nchw, params):
    x = jnp.transpose(x_nchw, (0, 2, 3, 1)).astype(jnp.bfloat16)   # NCHW -> NHWC
    feats = encoder_forward(x, params["encoder"])                  # [B, 2048] f32
    # dropout: eval-mode identity (see TODO at top of file)
    wT, b = params["fc_dec"]                                       # Linear(2048 -> 25088)
    dec = pallas_matmul_fused(feats, wT,
                              jnp.ones((wT.shape[1],), jnp.float32), b, act=None)
    B = dec.shape[0]
    dec = dec.reshape(B, 7, 7, 512)                                # already NHWC order
    for idx, st in enumerate(params["decoder"]):
        act = "sigmoid" if idx == len(params["decoder"]) - 1 else "relu"
        dec = conv_transpose2d_subpixel(dec, st, act=act)          # 7->14->28->56->112->224
    cc = params["cls_conv"]
    # classifier Conv2d(3->16,k3,p1) + ReLU + global avgpool fused into one kernel
    pooled = pallas_conv_relu_avgpool(dec, cc["conv"], cc["bias"])  # [B, 16] f32
    lwT, lb = params["cls_fc"]
    logits = pallas_matmul_fused(pooled, lwT,
                                 jnp.ones((lwT.shape[1],), jnp.float32), lb,
                                 act=None, out_dtype=jnp.float32)
    return logits                                                  # [B, num_classes]


if __name__ == "__main__":
    params = make_params(seed=0, num_classes=12)
    x = jax.random.normal(jax.random.PRNGKey(0), (2, 3, 32, 32), jnp.float32)  # NCHW
    logits = ae_avgpool_forward(x, params)
    logits = jax.block_until_ready(logits)
    assert logits.shape == (2, 12), logits.shape
    assert bool(jnp.all(jnp.isfinite(logits)))
    print("KERNEL_OK")
</pallas_src>

<mosaic_0001>
module attributes {stable_mosaic.version = 11 : i64} {
  func.func @_mm_kernel(%arg0: i32, %arg1: i32, %arg2: i32, %arg3: memref<256x147xbf16, #tpu.memory_space<vmem>>, %arg4: memref<147x128xbf16, #tpu.memory_space<vmem>>, %arg5: memref<1x128xf32, #tpu.memory_space<vmem>>, %arg6: memref<1x128xf32, #tpu.memory_space<vmem>>, %arg7: memref<256x128xbf16, #tpu.memory_space<vmem>>, %arg8: memref<256x128xf32, #tpu.memory_space<vmem>>) attributes {dimension_semantics = [#tpu.dimension_semantics<parallel>, #tpu.dimension_semantics<parallel>, #tpu.dimension_semantics<arbitrary>], iteration_bounds = array<i64: 2, 1, 1>, scalar_prefetch = 0 : i64, scratch_operands = 1 : i64, tpu.core_type = #tpu.core_type<tc>, window_params = [{transform_indices = @transform_0, window_bounds = array<i64: 256, 147>}, {transform_indices = @transform_1, window_bounds = array<i64: 147, 128>}, {transform_indices = @transform_2, window_bounds = array<i64: 1, 128>}, {transform_indices = @transform_3, window_bounds = array<i64: 1, 128>}, {transform_indices = @transform_4, window_bounds = array<i64: 256, 128>}]} {
    %c0_i32 = arith.constant 0 : i32
    %0 = arith.cmpi eq, %arg2, %c0_i32 : i32
    %1 = arith.extui %0 : i1 to i32
    %c0_i32_0 = arith.constant 0 : i32
    %2 = arith.cmpi ne, %1, %c0_i32_0 : i32
    scf.if %2 {
      %cst_10 = arith.constant 0.000000e+00 : f32
      %12 = vector.broadcast %cst_10 : f32 to vector<256x128xf32>
      %c0_11 = arith.constant 0 : index
      %c0_12 = arith.constant 0 : index
      %13 = vector.load %arg8[%c0_11, %c0_12] : memref<256x128xf32, #tpu.memory_space<vmem>>, vector<256x128xf32>
      tpu.vector_store %arg8[%c0_11, %c0_12], %12 {strides = array<i32>} : memref<256x128xf32, #tpu.memory_space<vmem>>, vector<256x128xf32>,
    } else {
    }
    %c0 = arith.constant 0 : index
    %c0_1 = arith.constant 0 : index
    %3 = vector.load %arg8[%c0, %c0_1] : memref<256x128xf32, #tpu.memory_space<vmem>>, vector<256x128xf32>
    %c0_2 = arith.constant 0 : index
    %c0_3 = arith.constant 0 : index
    %4 = vector.load %arg3[%c0_2, %c0_3] : memref<256x147xbf16, #tpu.memory_space<vmem>>, vector<256x147xbf16>
    %c0_4 = arith.constant 0 : index
    %c0_5 = arith.constant 0 : index
    %5 = vector.load %arg4[%c0_4, %c0_5] : memref<147x128xbf16, #tpu.memory_space<vmem>>, vector<147x128xbf16>
    %cst = arith.constant dense<0.000000e+00> : vector<256x128xf32>
    %6 = tpu.matmul %4, %5, %cst {dimension_numbers = #tpu.dot_dimension_numbers<[1], [0], [0], [1], [0, 0, 1, 1], [], []>} : vector<256x147xbf16>, vector<147x128xbf16>, vector<256x128xf32> -> vector<256x128xf32>
    %7 = arith.addf %3, %6 : vector<256x128xf32>
    %c0_6 = arith.constant 0 : index
    %c0_7 = arith.constant 0 : index
    %8 = vector.load %arg8[%c0_6, %c0_7] : memref<256x128xf32, #tpu.memory_space<vmem>>, vector<256x128xf32>
    tpu.vector_store %arg8[%c0_6, %c0_7], %7 {strides = array<i32>} : memref<256x128xf32, #tpu.memory_space<vmem>>, vector<256x128xf32>,
    %c0_i32_8 = arith.constant 0 : i32
    %9 = arith.cmpi eq, %arg2, %c0_i32_8 : i32
    %10 = arith.extui %9 : i1 to i32
    %c0_i32_9 = arith.constant 0 : i32
    %11 = arith.cmpi ne, %10, %c0_i32_9 : i32
    scf.if %11 {
      %c0_10 = arith.constant 0 : index
      %c0_11 = arith.constant 0 : index
      %12 = vector.load %arg8[%c0_10, %c0_11] : memref<256x128xf32, #tpu.memory_space<vmem>>, vector<256x128xf32>
      %c0_12 = arith.constant 0 : index
      %c0_13 = arith.constant 0 : index
      %13 = vector.load %arg5[%c0_12, %c0_13] : memref<1x128xf32, #tpu.memory_space<vmem>>, vector<1x128xf32>
      %14 = vector.broadcast %13 : vector<1x128xf32> to vector<256x128xf32>
      %15 = arith.mulf %12, %14 : vector<256x128xf32>
      %c0_14 = arith.constant 0 : index
      %c0_15 = arith.constant 0 : index
      %16 = vector.load %arg6[%c0_14, %c0_15] : memref<1x128xf32, #tpu.memory_space<vmem>>, vector<1x128xf32>
      %17 = vector.broadcast %16 : vector<1x128xf32> to vector<256x128xf32>
      %18 = arith.addf %15, %17 : vector<256x128xf32>
      %cst_16 = arith.constant 0.000000e+00 : f32
      %19 = vector.broadcast %cst_16 : f32 to vector<256x128xf32>
      %20 = arith.maximumf %18, %19 : vector<256x128xf32>
      %21 = arith.truncf %20 : vector<256x128xf32> to vector<256x128xbf16>
      %c0_17 = arith.constant 0 : index
      %c0_18 = arith.constant 0 : index
      %22 = vector.load %arg7[%c0_17, %c0_18] : memref<256x128xbf16, #tpu.memory_space<vmem>>, vector<256x128xbf16>
      tpu.vector_store %arg7[%c0_17, %c0_18], %21 {strides = array<i32>} : memref<256x128xbf16, #tpu.memory_space<vmem>>, vector<256x128xbf16>,
    } else {
    }
    return
  }
  func.func @transform_0(%arg0: i32, %arg1: i32, %arg2: i32) -> (i32, i32) {
    %c0_i32 = arith.constant 0 : i32
    return %arg0, %arg2 : i32, i32
  }
  func.func @transform_1(%arg0: i32, %arg1: i32, %arg2: i32) -> (i32, i32) {
    %c0_i32 = arith.constant 0 : i32
    return %arg2, %arg1 : i32, i32
  }
  func.func @transform_2(%arg0: i32, %arg1: i32, %arg2: i32) -> (i32, i32) {
    %c0_i32 = arith.constant 0 : i32
    %c0_i32_0 = arith.constant 0 : i32
    return %c0_i32, %arg1 : i32, i32
  }
  func.func @transform_3(%arg0: i32, %arg1: i32, %arg2: i32) -> (i32, i32) {
    %c0_i32 = arith.constant 0 : i32
    %c0_i32_0 = arith.constant 0 : i32
    return %c0_i32, %arg1 : i32, i32
  }
  func.func @transform_4(%arg0: i32, %arg1: i32, %arg2: i32) -> (i32, i32) {
    %c0_i32 = arith.constant 0 : i32
    return %arg0, %arg1 : i32, i32
  }
}

</mosaic_0001>

<bundles_post_ra>
// kernel: _lambda_.1
= control target key start
LH: loop header
LB: loop body
LE: loop exit
PB: predicated region body
PF: predicated region fallthrough
CT: control target
= control target key end

     0   :  { %9 = vsyncpa [#allocation4], 0  ;;  %s2086_s0 = inlined_call_operand.vmem [shape: bf16[512,147], index: 0, kind: input, shape index: {}]   ;;  %s2087_s1 = inlined_call_operand.vmem [shape: bf16[147,128], index: 1, kind: input, shape index: {}]   ;;  %s2088_s2 = inlined_call_operand.vmem [shape: f32[1,128], index: 2, kind: input, shape index: {}]   ;;  %s2089_s3 = inlined_call_operand.vmem [shape: f32[1,128], index: 3, kind: input, shape index: {}]   ;;  %s2090_s4 = inlined_call_operand.hbm [shape: bf16[512,128], index: 4, kind: output, shape index: {}]  }
   0x1   :  { %11 = vsyncpa [#allocation4 + $0x1], 0  ;;  %s1775_s15 = smov 0   ;;  %s1777_s16 = smov 0  }
   0x2   :  { %s1779_s17 = smov 0   ;;  %s1781_s18 = smov 0  }
   0x3   :  { %s1783_s19 = smov 0   ;;  %s1785_s20 = smov 0  }
   0x4 LB: > { %s1262_s21 = sadd.s32 4294967295, %s1745_s20   ;;  %s1263_s22 = sadd.s32 4294967294, %s1745_s20   ;;  %s1745_s20 = sphi %s1785_s20, %s17_s20   ;;  %s1741_s19 = sphi %s1783_s19, %s2097_s19   ;;  %s1737_s18 = sphi %s1781_s18, %s2096_s18   ;;  %s1733_s17 = sphi %s1779_s17, %s2095_s17   ;;  %s1729_s16 = sphi %s1777_s16, %s2094_s16   ;;  %s1725_s15 = sphi %s1775_s15, %s2093_s15  }
   0x5   : > { %s36_s23 = sadd.s32 1, %s1741_s19  ;;  %s153_s24 = sadd.s32 1, %s1733_s17 }
   0x6   : > { %p38_p0 = scmp.ge.s32.totalorder %s36_s23, 2  ;;  %p163_p1 = scmp.ne.s32.totalorder %s1733_s17, %s1729_s16 }
   0x7   : > { %p164_p2 = scmp.eq.s32.totalorder %s1262_s21, 1  ;;  %p169_p3 = scmp.ne.s32.totalorder %s1729_s16, %s1725_s15 }
   0x8   : > { %s2099_s23 = smov (%p38_p0, %s36_s23), 0  ;;  %p170_p5 = scmp.eq.s32.totalorder %s1263_s22, 1 }
   0x9   : > { %p1815_p4 = por %p164_p2, %p163_p1  ;;  %s148_s26 = ssub.s32 %s1741_s19, %s2099_s23 }
   0xa   : > { %p1269_p6 = scmp.ge.s32.totalorder %s1745_s20, 1  ;;  %p151_p7 = scmp.eq.s32.totalorder %s148_s26, 0 }
   0xb   : > { %p1822_p8 = por %p170_p5, %p169_p3  ;;  %p227_p9 = scmp.lt.s32.totalorder %s1745_s20, 3 }
   0xc   : > { %s1828_s28 = scalar_select %p151_p7, %s1733_s17, %s153_s24  }
   0xd   : > { %p228_p10 = pnand %p1269_p6, %p227_p9 }
   0xe   : > { %s1271_s7 = sshll.u32 (!%p228_p10), %s1737_s18, 5  ;;  %s269_s22 = sand.u32 (!%p228_p10), 1, %s1729_s16  }
   0xf   : > { %231 = sbr.rel (%p228_p10) target bundleno = 318 (0x13e), region = 36  ;;  %p274_p11 = scmp.lt.s32.totalorder (!%p228_p10), %s1271_s7, 63 }
  0x10   : > { %s1501_s29 = sshll.u32 (!%p228_p10), %s1737_s18, 7  ;;  %s1123_s8 = scalar_lea.sflag (!%p228_p10), [#allocation4], %s269_s22 }
  0x11   : > { %s1135_s6 = scalar_lea.hbm (!%p228_p10), %s2090_s4, %s1501_s29  ;;  %s1687_s13 = scalar_lea.hbm (!%p228_p10), %s2090_s4, 256 }
  0x14   : > { %v1499_v0 = vld [vmem:[%s2087_s1 + $0x38] sm:$0xff]  ;;  %v419_v1 = vld [vmem:[%s2087_s1 + $0x48] sm:$0x3]  ;;  %vm670_vm0 = vcmask 1040384   ;;  %vm671_vm1 = vcmask 1041408   ;;  %v1498_v3 = vld [vmem:[%s2087_s1 + $0x30] sm:$0xff] }
  0x15   : > { %v601_v2 = vunpack.c.l.b16 %v419_v1  ;;  %677 = vmatpush.bf16.msra.mxu0 %v1499_v0  ;;  %1597 = vmatpush.bf16.msra.mxu2 %v1499_v0  ;;  %v1747_v4 = vmov 65535   ;;  %s2101_s7 = smov (!%p274_p11, %s1271_s7), 63  ;;  %v1497_v9 = vld [vmem:[%s2087_s1 + $0x28] sm:$0xff]  ;;  %v1500_v10 = vld [vmem:[%s2087_s1 + $0x40] sm:$0xff]  ;;  %vm621_vm2 = vcmask 154624   ;;  %v1495_v18 = vld [vmem:[%s2087_s1 + $0x18] sm:$0xff] }
  0x16   : > { %v672_v5 = vsel %vm670_vm0, 4294967295, %v1747_v4  ;;  %s1459_s12 = sshll.u32 %s2101_s7, 3  ;;  %v1496_v14 = vld [vmem:[%s2087_s1 + $0x20] sm:$0xff]  ;;  %v1494_v19 = vld [vmem:[%s2087_s1 + $0x10] sm:$0xff]  ;;  %v1493_v20 = vld [vmem:[%s2087_s1 + $0x8] sm:$0xff]  ;;  %s1138_s7 = sshll.u32 %s1135_s6, 4  ;;  %s1139_s7 = int_to_ptr.hbm [resolvable:$true] %s1138_s7 }
  0x17   : > { %v611_v6 = vpack.c.b16 %v601_v2, %v601_v2  ;;  %v673_v7 = vsel %vm671_vm1, %v672_v5, 0  ;;  %s1849_s24 = scalar_lea.vmem %s2086_s0, %s1459_s12  ;;  %v1492_v26 = vld [vmem:[%s2087_s1] sm:$0xff]  ;;  %s1681_s9 = sshra.s32 %s1139_s7, 4  ;;  %s1682_s9 = int_to_ptr.hbm [resolvable:$true] %s1681_s9 }
  0x18   : > { %v1460_v11 = vld [vmem:[%s1849_s24 + $0x4] sm:$0xf]  ;;  %v1278_v12 = vld [vmem:[%s1849_s24 + $0x8] sm:$0xf0]  ;;  %v1478_v15 = vld [vmem:[%s1849_s24 + $0x94] sm:$0xf]  ;;  %p1688_p1 = scmp.lt.s32.totalorder %s1682_s9, %s2090_s4 }
  0x19   : > { %v675_v8 = vand.u32 %v673_v7, %v611_v6  ;;  %678 = vmatpush.bf16.msra.mxu0 %v1498_v3  ;;  %1598 = vmatpush.bf16.msra.mxu2 %v1498_v3  ;;  %v1281_v13 = vor.u32 %v1460_v11, %v1278_v12  ;;  %v1350_v16 = vld [vmem:[%s1849_s24 + $0x98] sm:$0xf0]  ;;  %v1462_v21 = vld [vmem:[%s1849_s24 + $0x14] sm:$0xf]  ;;  %v1480_v23 = vld [vmem:[%s1849_s24 + $0xa4] sm:$0xf] }
  0x1a   : > { %v1353_v17 = vor.u32 %v1478_v15, %v1350_v16  ;;  %v1286_v22 = vld [vmem:[%s1849_s24 + $0x18] sm:$0xf0]  ;;  %v1358_v24 = vld [vmem:[%s1849_s24 + $0xa8] sm:$0xf0]  ;;  %v1276_v27 = vld [vmem:[%s1849_s24] sm:$0xf] }
  0x1b   : > { %772 = vmatpush.bf16.msra.mxu1 %v675_v8  ;;  %1605 = vmatpush.bf16.msra.mxu3 %v675_v8  ;;  %v1289_v25 = vor.u32 %v1462_v21, %v1286_v22  ;;  %v1461_v28 = vld [vmem:[%s1849_s24 + $0x4] sm:$0xf0]  ;;  %v1340_v29 = vld [vmem:[%s1849_s24 + $0x80] sm:$0xf]  ;;  %v1361_v31 = vor.u32 %v1480_v23, %v1358_v24  ;;  %v1464_v34 = vld [vmem:[%s1849_s24 + $0x24] sm:$0xf] }
  0x1c   : > { %v1477_v30 = vld [vmem:[%s1849_s24 + $0x84] sm:$0xf0]  ;;  %v1277_v32 = vor.u32 %v1461_v28, %v1276_v27  ;;  %v1294_v35 = vld [vmem:[%s1849_s24 + $0x28] sm:$0xf0]  ;;  %v1482_v36 = vld [vmem:[%s1849_s24 + $0xb4] sm:$0xf] }
  0x1d   : > { %679 = vmatpush.bf16.msra.mxu0 %v1497_v9  ;;  %1599 = vmatpush.bf16.msra.mxu2 %v1497_v9  ;;  %v1341_v33 = vor.u32 %v1477_v30, %v1340_v29  ;;  %v1366_v37 = vld [vmem:[%s1849_s24 + $0xb8] sm:$0xf0]  ;;  %v1297_v38 = vor.u32 %v1464_v34, %v1294_v35  ;;  %v1284_v39 = vld [vmem:[%s1849_s24 + $0x10] sm:$0xf]  ;;  %v1463_v40 = vld [vmem:[%s1849_s24 + $0x14] sm:$0xf0] }
  0x1e   : > { %v1348_v41 = vld [vmem:[%s1849_s24 + $0x90] sm:$0xf]  ;;  %v1479_v42 = vld [vmem:[%s1849_s24 + $0x94] sm:$0xf0]  ;;  %v1369_v43 = vor.u32 %v1482_v36, %v1366_v37  ;;  %v1285_v44 = vor.u32 %v1463_v40, %v1284_v39  ;;  %v1466_v46 = vld [vmem:[%s1849_s24 + $0x34] sm:$0xf] }
  0x1f   : > { %773 = vmatpush.bf16.msra.mxu1 %v1500_v10  ;;  %1606 = vmatpush.bf16.msra.mxu3 %v1500_v10  ;;  %v1349_v45 = vor.u32 %v1479_v42, %v1348_v41  ;;  %v1302_v47 = vld [vmem:[%s1849_s24 + $0x38] sm:$0xf0]  ;;  %v1484_v48 = vld [vmem:[%s1849_s24 + $0xc4] sm:$0xf]  ;;  %v1374_v49 = vld [vmem:[%s1849_s24 + $0xc8] sm:$0xf0] }
  0x20   : > { %v1305_v50 = vor.u32 %v1466_v46, %v1302_v47  ;;  %v1292_v51 = vld [vmem:[%s1849_s24 + $0x20] sm:$0xf]  ;;  %v1465_v52 = vld [vmem:[%s1849_s24 + $0x24] sm:$0xf0]  ;;  %v1377_v55 = vor.u32 %v1484_v48, %v1374_v49  ;;  %v1468_v58 = vld [vmem:[%s1849_s24 + $0x44] sm:$0xf] }
  0x21   : > { %680 = vmatpush.bf16.msra.mxu0 %v1496_v14  ;;  %1600 = vmatpush.bf16.msra.mxu2 %v1496_v14  ;;  %v1356_v53 = vld [vmem:[%s1849_s24 + $0xa0] sm:$0xf]  ;;  %v1481_v54 = vld [vmem:[%s1849_s24 + $0xa4] sm:$0xf0]  ;;  %v1293_v56 = vor.u32 %v1465_v52, %v1292_v51  ;;  %v1310_v59 = vld [vmem:[%s1849_s24 + $0x48] sm:$0xf0] }
  0x22   : > { %1438 = vmatmul.msk.bf16.vlgmr.msra.gmra.mxu1 %vm621_vm2, %v1281_v13  ;;  %1447 = vmatmul.msk.bf16.vlgmr.msra.gmra.mxu3 %vm621_vm2, %v1353_v17  ;;  %v1357_v57 = vor.u32 %v1481_v54, %v1356_v53  ;;  %v1486_v60 = vld [vmem:[%s1849_s24 + $0xd4] sm:$0xf]  ;;  %v1382_v61 = vld [vmem:[%s1849_s24 + $0xd8] sm:$0xf0]  ;;  %v1313_v62 = vor.u32 %v1468_v58, %v1310_v59  ;;  %v1300_v63 = vld [vmem:[%s1849_s24 + $0x30] sm:$0xf] }
  0x23   : > { %v1467_v0 = vld [vmem:[%s1849_s24 + $0x34] sm:$0xf0]  ;;  %v1364_v1 = vld [vmem:[%s1849_s24 + $0xb0] sm:$0xf]  ;;  %v1385_v3 = vor.u32 %v1486_v60, %v1382_v61  ;;  %v1470_v6 = vld [vmem:[%s1849_s24 + $0x54] sm:$0xf] }
  0x24   : > { %v1483_v2 = vld [vmem:[%s1849_s24 + $0xb4] sm:$0xf0]  ;;  %v1301_v4 = vor.u32 %v1467_v0, %v1300_v63  ;;  %v1318_v7 = vld [vmem:[%s1849_s24 + $0x58] sm:$0xf0]  ;;  %v1488_v8 = vld [vmem:[%s1849_s24 + $0xe4] sm:$0xf] }
  0x25   : > { %681 = vmatpush.bf16.msra.mxu0 %v1495_v18  ;;  %1601 = vmatpush.bf16.msra.mxu2 %v1495_v18  ;;  %v1365_v5 = vor.u32 %v1483_v2, %v1364_v1  ;;  %v1390_v9 = vld [vmem:[%s1849_s24 + $0xe8] sm:$0xf0]  ;;  %v1321_v10 = vor.u32 %v1470_v6, %v1318_v7  ;;  %v1308_v11 = vld [vmem:[%s1849_s24 + $0x40] sm:$0xf]  ;;  %v1469_v12 = vld [vmem:[%s1849_s24 + $0x44] sm:$0xf0] }
  0x26   : > { %v1372_v13 = vld [vmem:[%s1849_s24 + $0xc0] sm:$0xf]  ;;  %v1485_v14 = vld [vmem:[%s1849_s24 + $0xc4] sm:$0xf0]  ;;  %v1393_v15 = vor.u32 %v1488_v8, %v1390_v9  ;;  %v1309_v16 = vor.u32 %v1469_v12, %v1308_v11  ;;  %v1472_v18 = vld [vmem:[%s1849_s24 + $0x64] sm:$0xf] }
  0x27   : > { %v1373_v17 = vor.u32 %v1485_v14, %v1372_v13  ;;  %v1398_v21 = vld [vmem:[%s1849_s24 + $0xf8] sm:$0xf0]  ;;  %v1316_v23 = vld [vmem:[%s1849_s24 + $0x50] sm:$0xf]  ;;  %v1471_v24 = vld [vmem:[%s1849_s24 + $0x54] sm:$0xf0] }
  0x28   : > { %v1317_v28 = vor.u32 %v1471_v24, %v1316_v23  ;;  %v1474_v30 = vld [vmem:[%s1849_s24 + $0x74] sm:$0xf]  ;;  %v1473_v34 = vld [vmem:[%s1849_s24 + $0x64] sm:$0xf0]  ;;  %v1388_v35 = vld [vmem:[%s1849_s24 + $0xe0] sm:$0xf] }
  0x29   : > { %682 = vmatpush.bf16.msra.mxu0 %v1494_v19  ;;  %1602 = vmatpush.bf16.msra.mxu2 %v1494_v19  ;;  %v1326_v19 = vld [vmem:[%s1849_s24 + $0x68] sm:$0xf0]  ;;  %v1489_v36 = vld [vmem:[%s1849_s24 + $0xe4] sm:$0xf0]  ;;  %v1476_v39 = vld [vmem:[%s1849_s24 + $0x84] sm:$0xf] }
  0x2a   : > { %v1329_v22 = vor.u32 %v1472_v18, %v1326_v19  ;;  %v1342_v40 = vld [vmem:[%s1849_s24 + $0x88] sm:$0xf0]  ;;  %v1332_v42 = vld [vmem:[%s1849_s24 + $0x70] sm:$0xf]  ;;  %v1491_v46 = vld [vmem:[%s1849_s24 + $0xf4] sm:$0xf0] }
  0x2b   : > { %v1345_v41 = vor.u32 %v1476_v39, %v1342_v40  ;;  %v1949_v54 = vld [vmem:[%s2088_s2] ss:$0 sm:$0xff]  ;;  %s1683_s10 = scalar_lea.hbm %s1682_s9, 128 }
  0x2c   : > { %p1684_p12 = scmp.ne.s32.totalorder %s1682_s9, %s1683_s10  ;;  %p1689_p2 = scmp.lt.s32.totalorder %s1687_s13, %s1683_s10 }
  0x2d   : > { %683 = vmatpush.bf16.msra.mxu0 %v1493_v20  ;;  %1603 = vmatpush.bf16.msra.mxu2 %v1493_v20  ;;  %v1490_v20 = vld [vmem:[%s1849_s24 + $0xf4] sm:$0xf] }
  0x2e   : > { %v1401_v27 = vor.u32 %v1490_v20, %v1398_v21  ;;  %p1685_p13 = pnand %p1684_p12, %p1815_p4  ;;  %p1690_p3 = por %p1689_p2, %p1688_p1 }
  0x30   : > { %p1686_p0 = pneg %p1685_p13 }
  0x31   : > { %684 = vmatpush.bf16.msra.mxu0 %v1492_v26  ;;  %1604 = vmatpush.bf16.msra.mxu2 %v1492_v26  ;;  %v1487_v26 = vld [vmem:[%s1849_s24 + $0xd4] sm:$0xf0] }
  0x32   : > { %1439 = vmatmul.msk.bf16.gmra.mxu1 %vm621_vm2, %v1289_v25  ;;  %1448 = vmatmul.msk.bf16.gmra.mxu3 %vm621_vm2, %v1361_v31  ;;  %v1380_v25 = vld [vmem:[%s1849_s24 + $0xd0] sm:$0xf]  ;;  %v1334_v31 = vld [vmem:[%s1849_s24 + $0x78] sm:$0xf0]  ;;  %p1691_p5 = pnand %p1690_p3, %p1686_p0 }
  0x33   : > { %v1381_v29 = vor.u32 %v1487_v26, %v1380_v25 }
  0x34   : > { %685 = vmatmul.bf16.vlgmr.msra.gmra.mxu0 %v1277_v32  ;;  %725 = vmatmul.bf16.vlgmr.msra.gmra.mxu2 %v1341_v33  ;;  %v1337_v32 = vor.u32 %v1474_v30, %v1334_v31  ;;  %v1324_v33 = vld [vmem:[%s1849_s24 + $0x60] sm:$0xf] }
  0x35   : > { %v1325_v37 = vor.u32 %v1473_v34, %v1324_v33 }
  0x42   : > { %1440 = vmatmul.msk.bf16.gmra.mxu1 %vm621_vm2, %v1297_v38  ;;  %1449 = vmatmul.msk.bf16.gmra.mxu3 %vm621_vm2, %v1369_v43  ;;  %v1389_v38 = vor.u32 %v1489_v36, %v1388_v35  ;;  %v1475_v43 = vld [vmem:[%s1849_s24 + $0x74] sm:$0xf0] }
  0x43   : > { %v1333_v47 = vor.u32 %v1475_v43, %v1332_v42 }
  0x44   : > { %690 = vmatmul.bf16.gmra.mxu0 %v1285_v44  ;;  %730 = vmatmul.bf16.gmra.mxu2 %v1349_v45  ;;  %v1396_v45 = vld [vmem:[%s1849_s24 + $0xf0] sm:$0xf]  ;;  %s1270_s24 = sshll.u32 %s269_s22, 7 }
  0x45   : > { %v1397_v48 = vor.u32 %v1491_v46, %v1396_v45  ;;  %s1967_s26 = scalar_lea.vmem [#allocation3], %s1270_s24 }
  0x46   : > { %s1136_s18 = sshll.u32 %s1967_s26, 4  ;;  %s1137_s18 = int_to_ptr.vmem [resolvable:$true] %s1136_s18 }
  0x52   : > { %1441 = vmatmul.msk.bf16.gmra.mxu1 %vm621_vm2, %v1305_v50  ;;  %1450 = vmatmul.msk.bf16.gmra.mxu3 %vm621_vm2, %v1377_v55 }
  0x54   : > { %695 = vmatmul.bf16.gmra.mxu0 %v1293_v56  ;;  %735 = vmatmul.bf16.gmra.mxu2 %v1357_v57  ;;  %v1955_v57 = vld [vmem:[%s2089_s3] ss:$0 sm:$0xff] }
  0x62   : > { %1442 = vmatmul.msk.bf16.gmra.mxu1 %vm621_vm2, %v1313_v62  ;;  %1451 = vmatmul.msk.bf16.gmra.mxu3 %vm621_vm2, %v1385_v3 }
  0x64   : > { %700 = vmatmul.bf16.gmra.mxu0 %v1301_v4  ;;  %740 = vmatmul.bf16.gmra.mxu2 %v1365_v5 }
  0x72   : > { %1443 = vmatmul.msk.bf16.gmra.mxu1 %vm621_vm2, %v1321_v10  ;;  %1452 = vmatmul.msk.bf16.gmra.mxu3 %vm621_vm2, %v1393_v15 }
  0x74   : > { %705 = vmatmul.bf16.gmra.mxu0 %v1309_v16  ;;  %745 = vmatmul.bf16.gmra.mxu2 %v1373_v17 }
  0x82   : > { %1444 = vmatmul.msk.bf16.gmra.mxu1 %vm621_vm2, %v1329_v22  ;;  %1453 = vmatmul.msk.bf16.gmra.mxu3 %vm621_vm2, %v1401_v27 }
  0x84   : > { %710 = vmatmul.bf16.gmra.mxu0 %v1317_v28  ;;  %750 = vmatmul.bf16.gmra.mxu2 %v1381_v29 }
  0x92   : > { %1445 = vmatmul.msk.bf16.gmra.mxu1 %vm621_vm2, %v1337_v32 }
  0x94   : > { %715 = vmatmul.bf16.gmra.mxu0 %v1325_v37  ;;  %755 = vmatmul.bf16.gmra.mxu2 %v1389_v38 }
  0x9f   : > { %v775_v44 = vpop.f32.mrf.mxu1 }
  0xa2   : > { %1446 = vmatmul.msk.bf16.gmra.mxu1 %vm621_vm2, %v1345_v41 }
  0xa4   : > { %720 = vmatmul.bf16.gmra.mxu0 %v1333_v47  ;;  %760 = vmatmul.bf16.gmra.mxu2 %v1397_v48 }
  0xa5   : > { %v820_v51 = vpop.f32.mrf.mxu3 }
  0xa7   : > { %v777_v49 = vpop.f32.mrf.mxu1 }
  0xad   : > { %v822_v59 = vpop.f32.mrf.mxu3 }
  0xaf   : > { %v780_v50 = vpop.f32.mrf.mxu1 }
  0xb1   : > { %v686_v52 = vpop.f32.mrf.mxu0 }
  0xb2   : > { %v776_v53 = vadd.f32 %v775_v44, %v686_v52 }
  0xb4   : > { %v958_v56 = vmul.f32 %v1949_v54, %v776_v53 }
  0xb5   : > { %v825_v7 = vpop.f32.mrf.mxu3 }
  0xb6   : > { %v994_v62 = vadd.f32 %v1955_v57, %v958_v56 }
  0xb7   : > { %v782_v55 = vpop.f32.mrf.mxu1  ;;  %v1957_v58 = vpop.f32.mrf.mxu2 }
  0xb8   : > { %v1026_v2 = vmax.f32 %v994_v62, 0.0 }
  0xb9   : > { %v688_v60 = vpop.f32.mrf.mxu0 }
  0xba   : > { %v778_v61 = vadd.f32 %v777_v49, %v688_v60 }
  0xbc   : > { %v959_v63 = vmul.f32 %v1949_v54, %v778_v61 }
  0xbd   : > { %v827_v17 = vpop.f32.mrf.mxu3 }
  0xbe   : > { %v995_v0 = vadd.f32 %v1955_v57, %v959_v63 }
  0xbf   : > { %v785_v1 = vpop.f32.mrf.mxu1  ;;  %v1965_v4 = vpop.f32.mrf.mxu2 }
  0xc0   : > { %v1027_v3 = vmax.f32 %v995_v0, 0.0 }
  0xc1   : > { %v691_v5 = vpop.f32.mrf.mxu0 }
  0xc2   : > { %v1505_v6 = vpack.c.bf16 %v1027_v3, %v1026_v2  ;;  %v781_v8 = vadd.f32 %v780_v50, %v691_v5 }
  0xc4   : > { %1506 = vst [vmem:[%s1967_s26] sm:$0xff] %v1505_v6   ;;  %v960_v10 = vmul.f32 %v1949_v54, %v781_v8 }
  0xc5   : > { %v830_v32 = vpop.f32.mrf.mxu3 }
  0xc6   : > { %v996_v15 = vadd.f32 %v1955_v57, %v960_v10 }
  0xc7   : > { %v787_v9 = vpop.f32.mrf.mxu1  ;;  %v731_v11 = vpop.f32.mrf.mxu2 }
  0xc8   : > { %v821_v14 = vadd.f32 %v820_v51, %v731_v11  ;;  %v1028_v21 = vmax.f32 %v996_v15, 0.0 }
  0xc9   : > { %v693_v12 = vpop.f32.mrf.mxu0 }
  0xca   : > { %v783_v13 = vadd.f32 %v782_v55, %v693_v12  ;;  %v976_v20 = vmul.f32 %v1949_v54, %v821_v14 }
  0xcc   : > { %v961_v16 = vmul.f32 %v1949_v54, %v783_v13  ;;  %v1012_v27 = vadd.f32 %v1955_v57, %v976_v20 }
  0xcd   : > { %v832_v49 = vpop.f32.mrf.mxu3 }
  0xce   : > { %v997_v18 = vadd.f32 %v1955_v57, %v961_v16  ;;  %v1044_v33 = vmax.f32 %v1012_v27, 0.0 }
  0xcf   : > { %v790_v19 = vpop.f32.mrf.mxu1  ;;  %v733_v23 = vpop.f32.mrf.mxu2 }
  0xd0   : > { %v1029_v22 = vmax.f32 %v997_v18, 0.0  ;;  %v823_v24 = vadd.f32 %v822_v59, %v733_v23 }
  0xd1   : > { %v696_v25 = vpop.f32.mrf.mxu0 }
  0xd2   : > { %v1510_v26 = vpack.c.bf16 %v1029_v22, %v1028_v21  ;;  %v977_v28 = vmul.f32 %v1949_v54, %v823_v24  ;;  %v786_v29 = vadd.f32 %v785_v1, %v696_v25 }
  0xd4   : > { %1582 = vst [vmem:[%s1967_s26 + $0x8] sm:$0xff] %v1510_v26   ;;  %v1013_v30 = vadd.f32 %v1955_v57, %v977_v28  ;;  %v962_v35 = vmul.f32 %v1949_v54, %v786_v29 }
  0xd5   : > { %v835_v5 = vpop.f32.mrf.mxu3 }
  0xd6   : > { %v1045_v34 = vmax.f32 %v1013_v30, 0.0  ;;  %v998_v41 = vadd.f32 %v1955_v57, %v962_v35 }
  0xd7   : > { %v792_v31 = vpop.f32.mrf.mxu1  ;;  %v736_v36 = vpop.f32.mrf.mxu2 }
  0xd8   : > { %v1550_v37 = vpack.c.bf16 %v1045_v34, %v1044_v33  ;;  %v826_v40 = vadd.f32 %v825_v7, %v736_v36  ;;  %v1030_v46 = vmax.f32 %v998_v41, 0.0 }
  0xd9   : > { %v698_v38 = vpop.f32.mrf.mxu0 }
  0xda   : > { %v788_v39 = vadd.f32 %v787_v9, %v698_v38  ;;  %1590 = vst [vmem:[%s1967_s26 + $0x48] sm:$0xff] %v1550_v37   ;;  %v978_v45 = vmul.f32 %v1949_v54, %v826_v40 }
  0xdc   : > { %v963_v42 = vmul.f32 %v1949_v54, %v788_v39  ;;  %v1014_v53 = vadd.f32 %v1955_v57, %v978_v45 }
  0xdd   : > { %v837_v21 = vpop.f32.mrf.mxu3 }
  0xde   : > { %v999_v43 = vadd.f32 %v1955_v57, %v963_v42  ;;  %v1046_v61 = vmax.f32 %v1014_v53, 0.0 }
  0xdf   : > { %v795_v44 = vpop.f32.mrf.mxu1  ;;  %v738_v48 = vpop.f32.mrf.mxu2 }
  0xe0   : > { %v1031_v47 = vmax.f32 %v999_v43, 0.0  ;;  %v828_v50 = vadd.f32 %v827_v17, %v738_v48 }
  0xe1   : > { %v701_v51 = vpop.f32.mrf.mxu0 }
  0xe2   : > { %v1515_v52 = vpack.c.bf16 %v1031_v47, %v1030_v46  ;;  %v979_v55 = vmul.f32 %v1949_v54, %v828_v50  ;;  %v791_v56 = vadd.f32 %v790_v19, %v701_v51 }
  0xe4   : > { %1583 = vst [vmem:[%s1967_s26 + $0x10] sm:$0xff] %v1515_v52   ;;  %v1015_v59 = vadd.f32 %v1955_v57, %v979_v55  ;;  %v964_v63 = vmul.f32 %v1949_v54, %v791_v56 }
  0xe5   : > { %v840_v36 = vpop.f32.mrf.mxu3 }
  0xe6   : > { %v1047_v62 = vmax.f32 %v1015_v59, 0.0  ;;  %v1000_v7 = vadd.f32 %v1955_v57, %v964_v63 }
  0xe7   : > { %v797_v60 = vpop.f32.mrf.mxu1  ;;  %v741_v0 = vpop.f32.mrf.mxu2 }
  0xe8   : > { %v1555_v1 = vpack.c.bf16 %v1047_v62, %v1046_v61  ;;  %v831_v6 = vadd.f32 %v830_v32, %v741_v0  ;;  %v1032_v12 = vmax.f32 %v1000_v7, 0.0 }
  0xe9   : > { %v703_v2 = vpop.f32.mrf.mxu0 }
  0xea   : > { %v793_v3 = vadd.f32 %v792_v31, %v703_v2  ;;  %1591 = vst [vmem:[%s1967_s26 + $0x50] sm:$0xff] %v1555_v1   ;;  %v980_v11 = vmul.f32 %v1949_v54, %v831_v6 }
  0xec   : > { %v965_v8 = vmul.f32 %v1949_v54, %v793_v3  ;;  %v1016_v18 = vadd.f32 %v1955_v57, %v980_v11 }
  0xed   : > { %v842_v53 = vpop.f32.mrf.mxu3 }
  0xee   : > { %v1001_v9 = vadd.f32 %v1955_v57, %v965_v8  ;;  %v1048_v24 = vmax.f32 %v1016_v18, 0.0 }
  0xef   : > { %v800_v10 = vpop.f32.mrf.mxu1  ;;  %v743_v14 = vpop.f32.mrf.mxu2 }
  0xf0   : > { %v1033_v13 = vmax.f32 %v1001_v9, 0.0  ;;  %v833_v15 = vadd.f32 %v832_v49, %v743_v14 }
  0xf1   : > { %v706_v16 = vpop.f32.mrf.mxu0 }
  0xf2   : > { %v1520_v17 = vpack.c.bf16 %v1033_v13, %v1032_v12  ;;  %v981_v19 = vmul.f32 %v1949_v54, %v833_v15  ;;  %v796_v20 = vadd.f32 %v795_v44, %v706_v16 }
  0xf4   : > { %1584 = vst [vmem:[%s1967_s26 + $0x18] sm:$0xff] %v1520_v17   ;;  %v1017_v22 = vadd.f32 %v1955_v57, %v981_v19  ;;  %v966_v26 = vmul.f32 %v1949_v54, %v796_v20 }
  0xf5   : > { %v845_v9 = vpop.f32.mrf.mxu3 }
  0xf6   : > { %v1049_v25 = vmax.f32 %v1017_v22, 0.0  ;;  %v1002_v32 = vadd.f32 %v1955_v57, %v966_v26 }
  0xf7   : > { %v802_v23 = vpop.f32.mrf.mxu1  ;;  %v746_v27 = vpop.f32.mrf.mxu2 }
  0xf8   : > { %v1560_v28 = vpack.c.bf16 %v1049_v25, %v1048_v24  ;;  %v836_v31 = vadd.f32 %v835_v5, %v746_v27  ;;  %v1034_v38 = vmax.f32 %v1002_v32, 0.0 }
  0xf9   : > { %v708_v29 = vpop.f32.mrf.mxu0 }
  0xfa   : > { %v798_v30 = vadd.f32 %v797_v60, %v708_v29  ;;  %1592 = vst [vmem:[%s1967_s26 + $0x58] sm:$0xff] %v1560_v28   ;;  %v982_v37 = vmul.f32 %v1949_v54, %v836_v31 }
  0xfc   : > { %v967_v33 = vmul.f32 %v1949_v54, %v798_v30  ;;  %v1018_v44 = vadd.f32 %v1955_v57, %v982_v37 }
  0xfd   : > { %v847_v24 = vpop.f32.mrf.mxu3 }
  0xfe   : > { %v1003_v34 = vadd.f32 %v1955_v57, %v967_v33  ;;  %v1050_v49 = vmax.f32 %v1018_v44, 0.0 }
  0xff   : > { %v805_v35 = vpop.f32.mrf.mxu1  ;;  %v748_v40 = vpop.f32.mrf.mxu2 }
 0x100   : > { %v1035_v39 = vmax.f32 %v1003_v34, 0.0  ;;  %v838_v41 = vadd.f32 %v837_v21, %v748_v40 }
 0x101   : > { %v711_v42 = vpop.f32.mrf.mxu0 }
 0x102   : > { %v1525_v43 = vpack.c.bf16 %v1035_v39, %v1034_v38  ;;  %v983_v45 = vmul.f32 %v1949_v54, %v838_v41  ;;  %v801_v46 = vadd.f32 %v800_v10, %v711_v42 }
 0x104   : > { %1585 = vst [vmem:[%s1967_s26 + $0x20] sm:$0xff] %v1525_v43   ;;  %v1019_v47 = vadd.f32 %v1955_v57, %v983_v45  ;;  %v968_v51 = vmul.f32 %v1949_v54, %v801_v46 }
 0x105   : > { %v850_v41 = vpop.f32.mrf.mxu3 }
 0x106   : > { %v1051_v50 = vmax.f32 %v1019_v47, 0.0  ;;  %v1004_v61 = vadd.f32 %v1955_v57, %v968_v51 }
 0x107   : > { %v807_v48 = vpop.f32.mrf.mxu1  ;;  %v751_v52 = vpop.f32.mrf.mxu2 }
 0x108   : > { %v1565_v55 = vpack.c.bf16 %v1051_v50, %v1050_v49  ;;  %v841_v60 = vadd.f32 %v840_v36, %v751_v52  ;;  %v1036_v2 = vmax.f32 %v1004_v61, 0.0 }
 0x109   : > { %v713_v56 = vpop.f32.mrf.mxu0 }
 0x10a   : > { %v803_v59 = vadd.f32 %v802_v23, %v713_v56  ;;  %1593 = vst [vmem:[%s1967_s26 + $0x60] sm:$0xff] %v1565_v55   ;;  %v984_v1 = vmul.f32 %v1949_v54, %v841_v60 }
 0x10c   : > { %v969_v62 = vmul.f32 %v1949_v54, %v803_v59  ;;  %v1020_v10 = vadd.f32 %v1955_v57, %v984_v1 }
 0x10e   : > { %v1005_v63 = vadd.f32 %v1955_v57, %v969_v62  ;;  %v1052_v15 = vmax.f32 %v1020_v10, 0.0 }
 0x10f   : > { %v810_v0 = vpop.f32.mrf.mxu1  ;;  %v753_v5 = vpop.f32.mrf.mxu2 }
 0x110   : > { %v1037_v3 = vmax.f32 %v1005_v63, 0.0  ;;  %v843_v6 = vadd.f32 %v842_v53, %v753_v5 }
 0x111   : > { %v716_v7 = vpop.f32.mrf.mxu0 }
 0x112   : > { %v1530_v8 = vpack.c.bf16 %v1037_v3, %v1036_v2  ;;  %v985_v11 = vmul.f32 %v1949_v54, %v843_v6  ;;  %v806_v12 = vadd.f32 %v805_v35, %v716_v7 }
 0x114   : > { %1586 = vst [vmem:[%s1967_s26 + $0x28] sm:$0xff] %v1530_v8   ;;  %v1021_v13 = vadd.f32 %v1955_v57, %v985_v11  ;;  %v970_v17 = vmul.f32 %v1949_v54, %v806_v12 }
 0x116   : > { %v1053_v16 = vmax.f32 %v1021_v13, 0.0  ;;  %v1006_v23 = vadd.f32 %v1955_v57, %v970_v17 }
 0x117   : > { %v812_v14 = vpop.f32.mrf.mxu1  ;;  %v756_v18 = vpop.f32.mrf.mxu2 }
 0x118   : > { %v1570_v19 = vpack.c.bf16 %v1053_v16, %v1052_v15  ;;  %v846_v22 = vadd.f32 %v845_v9, %v756_v18  ;;  %v1038_v29 = vmax.f32 %v1006_v23, 0.0 }
 0x119   : > { %v718_v20 = vpop.f32.mrf.mxu0 }
 0x11a   : > { %v808_v21 = vadd.f32 %v807_v48, %v718_v20  ;;  %1594 = vst [vmem:[%s1967_s26 + $0x68] sm:$0xff] %v1570_v19   ;;  %v986_v28 = vmul.f32 %v1949_v54, %v846_v22 }
 0x11c   : > { %v971_v25 = vmul.f32 %v1949_v54, %v808_v21  ;;  %v1022_v36 = vadd.f32 %v1955_v57, %v986_v28 }
 0x11e   : > { %v1007_v26 = vadd.f32 %v1955_v57, %v971_v25  ;;  %v1054_v43 = vmax.f32 %v1022_v36, 0.0 }
 0x11f   : > { %v815_v27 = vpop.f32.mrf.mxu1  ;;  %v758_v31 = vpop.f32.mrf.mxu2 }
 0x120   : > { %v1039_v30 = vmax.f32 %v1007_v26, 0.0  ;;  %v816_v32 = vadd.f32 %v815_v27, %v1957_v58  ;;  %v848_v33 = vadd.f32 %v847_v24, %v758_v31 }
 0x121   : > { %v721_v34 = vpop.f32.mrf.mxu0 }
 0x122   : > { %v1535_v35 = vpack.c.bf16 %v1039_v30, %v1038_v29  ;;  %v987_v37 = vmul.f32 %v1949_v54, %v848_v33  ;;  %v811_v38 = vadd.f32 %v810_v0, %v721_v34  ;;  %v974_v39 = vmul.f32 %v1949_v54, %v816_v32  ;;  %v852_v0 = vpop.f32.mrf.mxu3 }
 0x124   : > { %1587 = vst [vmem:[%s1967_s26 + $0x30] sm:$0xff] %v1535_v35   ;;  %v1023_v40 = vadd.f32 %v1955_v57, %v987_v37  ;;  %v972_v45 = vmul.f32 %v1949_v54, %v811_v38  ;;  %v1010_v47 = vadd.f32 %v1955_v57, %v974_v39 }
 0x126   : > { %v1055_v44 = vmax.f32 %v1023_v40, 0.0  ;;  %v1008_v55 = vadd.f32 %v1955_v57, %v972_v45  ;;  %v1042_v56 = vmax.f32 %v1010_v47, 0.0 }
 0x127   : > { %v817_v42 = vpop.f32.mrf.mxu1  ;;  %v761_v46 = vpop.f32.mrf.mxu2 }
 0x128   : > { %v818_v58 = vadd.f32 %v817_v42, %v1965_v4  ;;  %v1575_v48 = vpack.c.bf16 %v1055_v44, %v1054_v43  ;;  %v851_v53 = vadd.f32 %v850_v41, %v761_v46  ;;  %v1040_v63 = vmax.f32 %v1008_v55, 0.0 }
 0x129   : > { %v723_v50 = vpop.f32.mrf.mxu0 }
 0x12a   : > { %v975_v49 = vmul.f32 %v1949_v54, %v818_v58  ;;  %v813_v51 = vadd.f32 %v812_v14, %v723_v50  ;;  %1595 = vst [vmem:[%s1967_s26 + $0x70] sm:$0xff] %v1575_v48   ;;  %v988_v62 = vmul.f32 %v1949_v54, %v851_v53 }
 0x12c   : > { %v1011_v52 = vadd.f32 %v1955_v57, %v975_v49  ;;  %v973_v4 = vmul.f32 %v1949_v54, %v813_v51  ;;  %v1024_v6 = vadd.f32 %v1955_v57, %v988_v62 }
 0x12e   : > { %v1043_v59 = vmax.f32 %v1011_v52, 0.0  ;;  %v1009_v60 = vadd.f32 %v1955_v57, %v973_v4  ;;  %v1056_v9 = vmax.f32 %v1024_v6, 0.0 }
 0x12f   : > { %v763_v2 = vpop.f32.mrf.mxu2 }
 0x130   : > { %v1545_v61 = vpack.c.bf16 %v1043_v59, %v1042_v56  ;;  %v1041_v1 = vmax.f32 %v1009_v60, 0.0  ;;  %v853_v3 = vadd.f32 %v852_v0, %v763_v2 }
 0x132   : > { %1589 = vst [vmem:[%s1967_s26 + $0x40] sm:$0xff] %v1545_v61   ;;  %v1540_v5 = vpack.c.bf16 %v1041_v1, %v1040_v63  ;;  %v989_v7 = vmul.f32 %v1949_v54, %v853_v3 }
 0x134   : > { %1588 = vst [vmem:[%s1967_s26 + $0x38] sm:$0xff] %v1540_v5   ;;  %v1025_v8 = vadd.f32 %v1955_v57, %v989_v7 }
 0x136   : > { %v1057_v10 = vmax.f32 %v1025_v8, 0.0 }
 0x138   : > { %v1580_v11 = vpack.c.bf16 %v1057_v10, %v1056_v9 }
 0x13a   : > { %1596 = vst [vmem:[%s1967_s26 + $0x78] sm:$0xff] %v1580_v11  }
 0x13b   : > { %1694 = shalt.err (!%p1691_p5)
}
 0x13c   : > { %s1748_s22 = smov 64   ;;  %s1749_s24 = smov 4  }
 0x13d   : > { %1607 = dma.vmem_to_hbm [thread:$0]  (%p1815_p4), %s1137_s18, 2048, %s1139_s7, %s1123_s8, %s1748_s22, %s1748_s22, %s1749_s24  }
 0x13e PF: > { %p1613_p6 = scmp.ge.s32.totalorder %s1745_s20, 2  ;;  %s1153_s26 = sand.u32 1, %s1725_s15  }
 0x13f   : > { %s1154_s29 = scalar_lea.sflag [#allocation4], %s1153_s26 }
 0x140   : > { %p1610_p7 = pnand %p1613_p6, %p1822_p8 }
 0x142   : > { %p1611_p9 = pneg %p1610_p7 }
 0x144   : > { %1720 = dma.done.wait (%p1611_p9), %s1154_s29, 2048  }
 0x145   : > { %1722 = vsyncadd (%p1611_p9), %s1154_s29, 4294965248  ;;  %s17_s20 = sadd.s32 1, %s1745_s20   ;;  %s2093_s15 = smov %s1729_s16 }
 0x146   : > { %p14_p10 = scmp.ge.s32.totalorder %s17_s20, 4   ;;  %s2094_s16 = smov %s1733_s17 }
 0x147   : > { %s2095_s17 = smov %s1828_s28  ;;  %s2096_s18 = smov %s1741_s19 }
 0x148   : > { %s2097_s19 = smov %s2099_s23  ;;  %16 = sbr.rel (!%p14_p10) target bundleno = 4 (0x4), region = 88 }
 0x14d   :  { %1160 = vsyncpa [#allocation4], 1 }
 0x14e   :  { %1162 = vsyncpa [#allocation4 + $0x1], 1 }

</bundles_post_ra>
